<compile_context>
chip_gen: v5e
topology: v5e:2x2
jax: 0.10.0
libtpu: 0.0.40
codegen_flags: <defaults>
</compile_context>

<pallas_src>
import functools

import jax
import jax.numpy as jnp
from jax.experimental import pallas as pl
from jax.experimental.pallas import tpu as pltpu

ACTION_SCALE = 2.0  # canonical DDPG wrap_action: a -> tanh(a) * ACTION_SCALE

_VMEM_LIMIT_BYTES = 32 * 1024 * 1024  # raises v5e's 16 MiB scoped default; fits v7x's 64 MiB
_LIVE_BUFFERS = 6                     # (1 in + 1 out) x double-buffer + headroom


def default_wrap_action(a):
    return jnp.tanh(a) * ACTION_SCALE


def _ddpg_wrap_kernel(a_ref, act_ref, *, wrap_fn):
    """Elementwise wrap_action on one (tb, A) lane-dense tile."""
    act_ref[...] = wrap_fn(a_ref[...]).astype(act_ref.dtype)


def _pick_tb(B, A, itemsize):
    """Largest row-tile that keeps ~_LIVE_BUFFERS tiles inside the VMEM budget."""
    sub = max(8, 32 // itemsize)          # min sublane multiple: 8 f32 / 16 bf16 / 32 int8
    cap = _VMEM_LIMIT_BYTES // (_LIVE_BUFFERS * A * itemsize)
    tb = min(B, max(sub, cap))
    tb = (tb // sub) * sub
    while tb > sub and B % tb:
        tb -= sub
    if tb < sub or B % tb:
        tb = B                            # full-array block is always a legal block shape
    return tb


def ddpg_forward(actions, wrap_action=None, *, tb=None, donate_actions=False):
    """Applies wrap_action to `actions` with a Pallas kernel. Returns wrapped actions."""
    wrap_fn = wrap_action if wrap_action is not None else default_wrap_action
    orig_shape = actions.shape
    A = orig_shape[-1]
    x = actions.reshape(-1, A)            # flatten to a lane-dense 2-D slab
    B = x.shape[0]
    itemsize = jnp.dtype(x.dtype).itemsize

    # Sub-tile inputs: pallas_call fixed overhead exceeds the work; let XLA fuse it.
    if B * A < 8 * 128:
        return wrap_fn(x).astype(x.dtype).reshape(orig_shape)

    if tb is None:
        tb = _pick_tb(B, A, itemsize)
    assert B % tb == 0, "tb must divide the (flattened) batch"

    kernel = functools.partial(_ddpg_wrap_kernel, wrap_fn=wrap_fn)
    spec = pl.BlockSpec((tb, A), lambda i: (i, 0))

    wrapped = pl.pallas_call(
        kernel,
        out_shape=jax.ShapeDtypeStruct((B, A), x.dtype),
        grid_spec=pltpu.PrefetchScalarGridSpec(
            num_scalar_prefetch=0,
            grid=(B // tb,),              # 1-D grid: fewer, fatter contiguous DMAs
            in_specs=[spec],
            out_specs=spec,
        ),
        compiler_params=pltpu.CompilerParams(
            dimension_semantics=("parallel",),   # lets v7x's 2 TCs split the batch loop
            vmem_limit_bytes=_VMEM_LIMIT_BYTES,
        ),
        input_output_aliases=({0: 0} if donate_actions else {}),
    )(x)
    return wrapped.reshape(orig_shape)


class DDPGDist:
    """Mirror of the PyTorch DDPGDist."""

    def __init__(self, actions):
        self.actions = actions

    def sample(self):
        return self.actions               # fresh buffer produced by the kernel

    def log_prob(self, actions):
        # torch.ones(actions.shape) — constant, float32; produced lazily, never
        # written to HBM by the kernel.
        return jnp.ones(actions.shape, jnp.float32)


class DDPG:
    """JAX/Pallas port of the PyTorch DDPG module."""

    def __init__(self, wrap_action=None):
        # TODO(synk): wrap_action must be a JAX-traceable *elementwise* callable;
        # it is traced into the Pallas kernel body per tile (default tanh * 2.0).
        self.wrap_action = wrap_action if wrap_action is not None else default_wrap_action

    def __call__(self, actions):
        return DDPGDist(ddpg_forward(actions, self.wrap_action))


if __name__ == "__main__":
    key = jax.random.PRNGKey(0)
    B, A = 256, 256                       # small, tile-aligned, > one vreg
    actions = jax.random.normal(key, (B, A), dtype=jnp.float32)

    model = DDPG()
    dist = model(actions)

    sample = jax.block_until_ready(dist.sample())
    logp = jax.block_until_ready(dist.log_prob(sample))

    ref = jnp.tanh(actions) * ACTION_SCALE
    assert sample.shape == (B, A) and logp.shape == (B, A)
    assert logp.dtype == jnp.float32
    assert jnp.allclose(sample, ref, atol=1e-5)
    assert jnp.allclose(logp, 1.0)

    # Also exercise a multi-step 1-D grid explicitly (tb=64 -> 4 grid steps).
    sample2 = jax.block_until_ready(ddpg_forward(actions, tb=64))
    assert jnp.allclose(sample2, ref, atol=1e-5)

    print("KERNEL_OK")
</pallas_src>

<mosaic_0001>
module attributes {stable_mosaic.version = 11 : i64} {
  func.func @_ddpg_wrap_kernel(%arg0: i32, %arg1: memref<256x256xf32, #tpu.memory_space<vmem>>, %arg2: memref<256x256xf32, #tpu.memory_space<vmem>>) attributes {dimension_semantics = [#tpu.dimension_semantics<parallel>], iteration_bounds = array<i64: 1>, scalar_prefetch = 0 : i64, scratch_operands = 0 : i64, tpu.core_type = #tpu.core_type<tc>, window_params = [{transform_indices = @transform_0, window_bounds = array<i64: 256, 256>}, {transform_indices = @transform_1, window_bounds = array<i64: 256, 256>}]} {
    %c0 = arith.constant 0 : index
    %c0_0 = arith.constant 0 : index
    %0 = vector.load %arg1[%c0, %c0_0] : memref<256x256xf32, #tpu.memory_space<vmem>>, vector<256x256xf32>
    %1 = math.tanh %0 : vector<256x256xf32>
    %cst = arith.constant 2.000000e+00 : f32
    %2 = vector.broadcast %cst : f32 to vector<256x256xf32>
    %3 = arith.mulf %1, %2 : vector<256x256xf32>
    %c0_1 = arith.constant 0 : index
    %c0_2 = arith.constant 0 : index
    %4 = vector.load %arg2[%c0_1, %c0_2] : memref<256x256xf32, #tpu.memory_space<vmem>>, vector<256x256xf32>
    tpu.vector_store %arg2[%c0_1, %c0_2], %3 {strides = array<i32>} : memref<256x256xf32, #tpu.memory_space<vmem>>, vector<256x256xf32>,
    return
  }
  func.func @transform_0(%arg0: i32) -> (i32, i32) {
    %c0_i32 = arith.constant 0 : i32
    %c0_i32_0 = arith.constant 0 : i32
    return %arg0, %c0_i32 : i32, i32
  }
  func.func @transform_1(%arg0: i32) -> (i32, i32) {
    %c0_i32 = arith.constant 0 : i32
    %c0_i32_0 = arith.constant 0 : i32
    return %arg0, %c0_i32 : i32, i32
  }
}

</mosaic_0001>

<bundles_post_ra>
// kernel: tpu_custom_call.1
= control target key start
LH: loop header
LB: loop body
LE: loop exit
PB: predicated region body
PF: predicated region fallthrough
CT: control target
= control target key end

     0   :  { %6 = vsyncpa [#allocation3], 0  ;;  %s510_s0 = inlined_call_operand.hbm [shape: f32[256,256], index: 0, kind: input, shape index: {}]   ;;  %s511_s1 = inlined_call_operand.hbm [shape: f32[256,256], index: 1, kind: output, shape index: {}]  }
   0x1   :  { %7 = vsyncpa [#allocation4], 0  ;;  %s12_s8 = sshll.u32 %s510_s0, 4  ;;  %s484_s9 = smov [#allocation2]   ;;  %s13_s8 = int_to_ptr.hbm [resolvable:$true] %s12_s8 }
   0x2   :  { %s14_s10 = sshll.u32 %s484_s9, 4  ;;  %s485_s11 = smov 256   ;;  %s15_s10 = int_to_ptr.vmem [resolvable:$true] %s14_s10 }
   0x3   :  { %s486_s12 = smov 16  }
   0x4   :  { %20 = dma.hbm_to_vmem [thread:$0]  %s13_s8, 8192, %s15_s10, [#allocation3], %s485_s11, %s485_s11, %s486_s12  }
   0x5   :  { %480 = dma.done.wait [#allocation3], 8192  }
   0x6   :  { %481 = vsyncadd [#allocation3], 4294959104  ;;  %v25_v0 = vld [vmem:[#allocation2] sm:$0xff]  ;;  %v26_v1 = vld [vmem:[#allocation2 + $0x8] sm:$0xff]  ;;  %s487_s0 = smov [#allocation5]   ;;  %s287_s16 = sshll.u32 %s511_s1, 4  ;;  %s288_s16 = int_to_ptr.hbm [resolvable:$true] %s287_s16 }
   0x7   :  { %v27_v2 = vld [vmem:[#allocation2 + $0x10] sm:$0xff]  ;;  %304 = vtanh.f32 %v25_v0  ;;  %v28_v3 = vld [vmem:[#allocation2 + $0x18] sm:$0xff]  ;;  %v29_v4 = vld [vmem:[#allocation2 + $0x20] sm:$0xff]  ;;  %s285_s13 = sshll.u32 %s487_s0, 4  ;;  %s286_s13 = int_to_ptr.vmem [resolvable:$true] %s285_s13 }
   0x8   :  { %306 = vtanh.f32 %v26_v1  ;;  %v30_v5 = vld [vmem:[#allocation2 + $0x28] sm:$0xff]  ;;  %v31_v6 = vld [vmem:[#allocation2 + $0x30] sm:$0xff]  ;;  %v32_v7 = vld [vmem:[#allocation2 + $0x38] sm:$0xff] }
   0x9   :  { %308 = vtanh.f32 %v27_v2  ;;  %v33_v8 = vld [vmem:[#allocation2 + $0x40] sm:$0xff]  ;;  %v34_v10 = vld [vmem:[#allocation2 + $0x48] sm:$0xff]  ;;  %v35_v13 = vld [vmem:[#allocation2 + $0x50] sm:$0xff] }
   0xa   :  { %310 = vtanh.f32 %v28_v3  ;;  %v36_v16 = vld [vmem:[#allocation2 + $0x58] sm:$0xff]  ;;  %v37_v19 = vld [vmem:[#allocation2 + $0x60] sm:$0xff]  ;;  %v38_v22 = vld [vmem:[#allocation2 + $0x68] sm:$0xff] }
   0xb   :  { %312 = vtanh.f32 %v29_v4  ;;  %v39_v25 = vld [vmem:[#allocation2 + $0x70] sm:$0xff]  ;;  %v40_v28 = vld [vmem:[#allocation2 + $0x78] sm:$0xff]  ;;  %v41_v31 = vld [vmem:[#allocation2 + $0x80] sm:$0xff] }
   0xc   :  { %314 = vtanh.f32 %v30_v5  ;;  %v42_v34 = vld [vmem:[#allocation2 + $0x88] sm:$0xff]  ;;  %v43_v37 = vld [vmem:[#allocation2 + $0x90] sm:$0xff]  ;;  %v44_v40 = vld [vmem:[#allocation2 + $0x98] sm:$0xff] }
   0xd   :  { %v305_v9 = vpop.eup %304  ;;  %316 = vtanh.f32 %v31_v6  ;;  %v45_v43 = vld [vmem:[#allocation2 + $0xa0] sm:$0xff]  ;;  %v46_v46 = vld [vmem:[#allocation2 + $0xa8] sm:$0xff]  ;;  %v47_v49 = vld [vmem:[#allocation2 + $0xb0] sm:$0xff] }
   0xe   :  { %v307_v11 = vpop.eup %306  ;;  %v153_v12 = vmul.f32 2.0, %v305_v9  ;;  %318 = vtanh.f32 %v32_v7  ;;  %v48_v52 = vld [vmem:[#allocation2 + $0xb8] sm:$0xff]  ;;  %v49_v55 = vld [vmem:[#allocation2 + $0xc0] sm:$0xff]  ;;  %v50_v58 = vld [vmem:[#allocation2 + $0xc8] sm:$0xff] }
   0xf   :  { %v309_v14 = vpop.eup %308  ;;  %v154_v15 = vmul.f32 2.0, %v307_v11  ;;  %320 = vtanh.f32 %v33_v8  ;;  %v51_v61 = vld [vmem:[#allocation2 + $0xd0] sm:$0xff]  ;;  %v52_v0 = vld [vmem:[#allocation2 + $0xd8] sm:$0xff]  ;;  %v53_v3 = vld [vmem:[#allocation2 + $0xe0] sm:$0xff] }
  0x10   :  { %v311_v17 = vpop.eup %310  ;;  %217 = vst [vmem:[#allocation5] sm:$0xff] %v153_v12  ;;  %v155_v18 = vmul.f32 2.0, %v309_v14  ;;  %322 = vtanh.f32 %v34_v10  ;;  %v54_v6 = vld [vmem:[#allocation2 + $0xe8] sm:$0xff]  ;;  %v55_v9 = vld [vmem:[#allocation2 + $0xf0] sm:$0xff]  ;;  %v56_v12 = vld [vmem:[#allocation2 + $0xf8] sm:$0xff] }
  0x11   :  { %v313_v20 = vpop.eup %312  ;;  %218 = vst [vmem:[#allocation5 + $0x8] sm:$0xff] %v154_v15  ;;  %v156_v21 = vmul.f32 2.0, %v311_v17  ;;  %324 = vtanh.f32 %v35_v13  ;;  %v57_v15 = vld [vmem:[#allocation2 + $0x100] sm:$0xff] }
  0x12   :  { %v315_v23 = vpop.eup %314  ;;  %219 = vst [vmem:[#allocation5 + $0x10] sm:$0xff] %v155_v18  ;;  %v157_v24 = vmul.f32 2.0, %v313_v20  ;;  %326 = vtanh.f32 %v36_v16  ;;  %v58_v18 = vld [vmem:[#allocation2 + $0x108] sm:$0xff] }
  0x13   :  { %v317_v26 = vpop.eup %316  ;;  %220 = vst [vmem:[#allocation5 + $0x18] sm:$0xff] %v156_v21  ;;  %v158_v27 = vmul.f32 2.0, %v315_v23  ;;  %328 = vtanh.f32 %v37_v19  ;;  %v59_v21 = vld [vmem:[#allocation2 + $0x110] sm:$0xff] }
  0x14   :  { %v319_v29 = vpop.eup %318  ;;  %221 = vst [vmem:[#allocation5 + $0x20] sm:$0xff] %v157_v24  ;;  %v159_v30 = vmul.f32 2.0, %v317_v26  ;;  %330 = vtanh.f32 %v38_v22  ;;  %v60_v24 = vld [vmem:[#allocation2 + $0x118] sm:$0xff] }
  0x15   :  { %v321_v32 = vpop.eup %320  ;;  %222 = vst [vmem:[#allocation5 + $0x28] sm:$0xff] %v158_v27  ;;  %v160_v33 = vmul.f32 2.0, %v319_v29  ;;  %332 = vtanh.f32 %v39_v25  ;;  %v61_v27 = vld [vmem:[#allocation2 + $0x120] sm:$0xff] }
  0x16   :  { %v323_v35 = vpop.eup %322  ;;  %223 = vst [vmem:[#allocation5 + $0x30] sm:$0xff] %v159_v30  ;;  %v161_v36 = vmul.f32 2.0, %v321_v32  ;;  %334 = vtanh.f32 %v40_v28  ;;  %v62_v30 = vld [vmem:[#allocation2 + $0x128] sm:$0xff] }
  0x17   :  { %v325_v38 = vpop.eup %324  ;;  %224 = vst [vmem:[#allocation5 + $0x38] sm:$0xff] %v160_v33  ;;  %v162_v39 = vmul.f32 2.0, %v323_v35  ;;  %336 = vtanh.f32 %v41_v31  ;;  %v63_v33 = vld [vmem:[#allocation2 + $0x130] sm:$0xff] }
  0x18   :  { %v327_v41 = vpop.eup %326  ;;  %225 = vst [vmem:[#allocation5 + $0x40] sm:$0xff] %v161_v36  ;;  %v163_v42 = vmul.f32 2.0, %v325_v38  ;;  %338 = vtanh.f32 %v42_v34  ;;  %v64_v36 = vld [vmem:[#allocation2 + $0x138] sm:$0xff] }
  0x19   :  { %v329_v44 = vpop.eup %328  ;;  %226 = vst [vmem:[#allocation5 + $0x48] sm:$0xff] %v162_v39  ;;  %v164_v45 = vmul.f32 2.0, %v327_v41  ;;  %340 = vtanh.f32 %v43_v37  ;;  %v65_v39 = vld [vmem:[#allocation2 + $0x140] sm:$0xff] }
  0x1a   :  { %v331_v47 = vpop.eup %330  ;;  %227 = vst [vmem:[#allocation5 + $0x50] sm:$0xff] %v163_v42  ;;  %v165_v48 = vmul.f32 2.0, %v329_v44  ;;  %342 = vtanh.f32 %v44_v40  ;;  %v66_v42 = vld [vmem:[#allocation2 + $0x148] sm:$0xff] }
  0x1b   :  { %v333_v50 = vpop.eup %332  ;;  %228 = vst [vmem:[#allocation5 + $0x58] sm:$0xff] %v164_v45  ;;  %v166_v51 = vmul.f32 2.0, %v331_v47  ;;  %344 = vtanh.f32 %v45_v43  ;;  %v67_v45 = vld [vmem:[#allocation2 + $0x150] sm:$0xff] }
  0x1c   :  { %v335_v53 = vpop.eup %334  ;;  %229 = vst [vmem:[#allocation5 + $0x60] sm:$0xff] %v165_v48  ;;  %v167_v54 = vmul.f32 2.0, %v333_v50  ;;  %346 = vtanh.f32 %v46_v46  ;;  %v68_v48 = vld [vmem:[#allocation2 + $0x158] sm:$0xff] }
  0x1d   :  { %v337_v56 = vpop.eup %336  ;;  %230 = vst [vmem:[#allocation5 + $0x68] sm:$0xff] %v166_v51  ;;  %v168_v57 = vmul.f32 2.0, %v335_v53  ;;  %348 = vtanh.f32 %v47_v49  ;;  %v69_v51 = vld [vmem:[#allocation2 + $0x160] sm:$0xff] }
  0x1e   :  { %v339_v59 = vpop.eup %338  ;;  %231 = vst [vmem:[#allocation5 + $0x70] sm:$0xff] %v167_v54  ;;  %v169_v60 = vmul.f32 2.0, %v337_v56  ;;  %350 = vtanh.f32 %v48_v52  ;;  %v70_v54 = vld [vmem:[#allocation2 + $0x168] sm:$0xff] }
  0x1f   :  { %v341_v62 = vpop.eup %340  ;;  %232 = vst [vmem:[#allocation5 + $0x78] sm:$0xff] %v168_v57  ;;  %v170_v63 = vmul.f32 2.0, %v339_v59  ;;  %352 = vtanh.f32 %v49_v55  ;;  %v71_v57 = vld [vmem:[#allocation2 + $0x170] sm:$0xff] }
  0x20   :  { %v343_v1 = vpop.eup %342  ;;  %233 = vst [vmem:[#allocation5 + $0x80] sm:$0xff] %v169_v60  ;;  %v171_v2 = vmul.f32 2.0, %v341_v62  ;;  %354 = vtanh.f32 %v50_v58  ;;  %v72_v60 = vld [vmem:[#allocation2 + $0x178] sm:$0xff] }
  0x21   :  { %v345_v4 = vpop.eup %344  ;;  %234 = vst [vmem:[#allocation5 + $0x88] sm:$0xff] %v170_v63  ;;  %v172_v5 = vmul.f32 2.0, %v343_v1  ;;  %356 = vtanh.f32 %v51_v61  ;;  %v73_v63 = vld [vmem:[#allocation2 + $0x180] sm:$0xff] }
  0x22   :  { %v347_v7 = vpop.eup %346  ;;  %235 = vst [vmem:[#allocation5 + $0x90] sm:$0xff] %v171_v2  ;;  %v173_v8 = vmul.f32 2.0, %v345_v4  ;;  %358 = vtanh.f32 %v52_v0  ;;  %v74_v2 = vld [vmem:[#allocation2 + $0x188] sm:$0xff] }
  0x23   :  { %v349_v10 = vpop.eup %348  ;;  %236 = vst [vmem:[#allocation5 + $0x98] sm:$0xff] %v172_v5  ;;  %v174_v11 = vmul.f32 2.0, %v347_v7  ;;  %360 = vtanh.f32 %v53_v3  ;;  %v75_v5 = vld [vmem:[#allocation2 + $0x190] sm:$0xff] }
  0x24   :  { %v351_v13 = vpop.eup %350  ;;  %237 = vst [vmem:[#allocation5 + $0xa0] sm:$0xff] %v173_v8  ;;  %v175_v14 = vmul.f32 2.0, %v349_v10  ;;  %362 = vtanh.f32 %v54_v6  ;;  %v76_v8 = vld [vmem:[#allocation2 + $0x198] sm:$0xff] }
  0x25   :  { %v353_v16 = vpop.eup %352  ;;  %238 = vst [vmem:[#allocation5 + $0xa8] sm:$0xff] %v174_v11  ;;  %v176_v17 = vmul.f32 2.0, %v351_v13  ;;  %364 = vtanh.f32 %v55_v9  ;;  %v77_v11 = vld [vmem:[#allocation2 + $0x1a0] sm:$0xff] }
  0x26   :  { %v355_v19 = vpop.eup %354  ;;  %239 = vst [vmem:[#allocation5 + $0xb0] sm:$0xff] %v175_v14  ;;  %v177_v20 = vmul.f32 2.0, %v353_v16  ;;  %366 = vtanh.f32 %v56_v12  ;;  %v78_v14 = vld [vmem:[#allocation2 + $0x1a8] sm:$0xff] }
  0x27   :  { %v357_v22 = vpop.eup %356  ;;  %240 = vst [vmem:[#allocation5 + $0xb8] sm:$0xff] %v176_v17  ;;  %v178_v23 = vmul.f32 2.0, %v355_v19  ;;  %368 = vtanh.f32 %v57_v15  ;;  %v79_v17 = vld [vmem:[#allocation2 + $0x1b0] sm:$0xff] }
  0x28   :  { %v359_v25 = vpop.eup %358  ;;  %241 = vst [vmem:[#allocation5 + $0xc0] sm:$0xff] %v177_v20  ;;  %v179_v26 = vmul.f32 2.0, %v357_v22  ;;  %370 = vtanh.f32 %v58_v18  ;;  %v80_v20 = vld [vmem:[#allocation2 + $0x1b8] sm:$0xff] }
  0x29   :  { %v361_v28 = vpop.eup %360  ;;  %242 = vst [vmem:[#allocation5 + $0xc8] sm:$0xff] %v178_v23  ;;  %v180_v29 = vmul.f32 2.0, %v359_v25  ;;  %372 = vtanh.f32 %v59_v21  ;;  %v81_v23 = vld [vmem:[#allocation2 + $0x1c0] sm:$0xff] }
  0x2a   :  { %v363_v31 = vpop.eup %362  ;;  %243 = vst [vmem:[#allocation5 + $0xd0] sm:$0xff] %v179_v26  ;;  %v181_v32 = vmul.f32 2.0, %v361_v28  ;;  %374 = vtanh.f32 %v60_v24  ;;  %v82_v26 = vld [vmem:[#allocation2 + $0x1c8] sm:$0xff] }
  0x2b   :  { %v365_v34 = vpop.eup %364  ;;  %244 = vst [vmem:[#allocation5 + $0xd8] sm:$0xff] %v180_v29  ;;  %v182_v35 = vmul.f32 2.0, %v363_v31  ;;  %376 = vtanh.f32 %v61_v27  ;;  %v83_v29 = vld [vmem:[#allocation2 + $0x1d0] sm:$0xff] }
  0x2c   :  { %v367_v37 = vpop.eup %366  ;;  %245 = vst [vmem:[#allocation5 + $0xe0] sm:$0xff] %v181_v32  ;;  %v183_v38 = vmul.f32 2.0, %v365_v34  ;;  %378 = vtanh.f32 %v62_v30  ;;  %v84_v32 = vld [vmem:[#allocation2 + $0x1d8] sm:$0xff] }
  0x2d   :  { %v369_v40 = vpop.eup %368  ;;  %246 = vst [vmem:[#allocation5 + $0xe8] sm:$0xff] %v182_v35  ;;  %v184_v41 = vmul.f32 2.0, %v367_v37  ;;  %380 = vtanh.f32 %v63_v33  ;;  %v85_v35 = vld [vmem:[#allocation2 + $0x1e0] sm:$0xff] }
  0x2e   :  { %v371_v43 = vpop.eup %370  ;;  %247 = vst [vmem:[#allocation5 + $0xf0] sm:$0xff] %v183_v38  ;;  %v185_v44 = vmul.f32 2.0, %v369_v40  ;;  %382 = vtanh.f32 %v64_v36  ;;  %v86_v38 = vld [vmem:[#allocation2 + $0x1e8] sm:$0xff] }
  0x2f   :  { %v373_v46 = vpop.eup %372  ;;  %248 = vst [vmem:[#allocation5 + $0xf8] sm:$0xff] %v184_v41  ;;  %v186_v47 = vmul.f32 2.0, %v371_v43  ;;  %384 = vtanh.f32 %v65_v39  ;;  %v87_v41 = vld [vmem:[#allocation2 + $0x1f0] sm:$0xff] }
  0x30   :  { %v375_v49 = vpop.eup %374  ;;  %249 = vst [vmem:[#allocation5 + $0x100] sm:$0xff] %v185_v44  ;;  %v187_v50 = vmul.f32 2.0, %v373_v46  ;;  %386 = vtanh.f32 %v66_v42  ;;  %v88_v44 = vld [vmem:[#allocation2 + $0x1f8] sm:$0xff] }
  0x31   :  { %v377_v52 = vpop.eup %376  ;;  %250 = vst [vmem:[#allocation5 + $0x108] sm:$0xff] %v186_v47  ;;  %v188_v53 = vmul.f32 2.0, %v375_v49  ;;  %388 = vtanh.f32 %v67_v45 }
  0x32   :  { %v379_v55 = vpop.eup %378  ;;  %251 = vst [vmem:[#allocation5 + $0x110] sm:$0xff] %v187_v50  ;;  %v189_v56 = vmul.f32 2.0, %v377_v52  ;;  %390 = vtanh.f32 %v68_v48 }
  0x33   :  { %v381_v58 = vpop.eup %380  ;;  %252 = vst [vmem:[#allocation5 + $0x118] sm:$0xff] %v188_v53  ;;  %v190_v59 = vmul.f32 2.0, %v379_v55  ;;  %392 = vtanh.f32 %v69_v51 }
  0x34   :  { %v383_v61 = vpop.eup %382  ;;  %253 = vst [vmem:[#allocation5 + $0x120] sm:$0xff] %v189_v56  ;;  %v191_v62 = vmul.f32 2.0, %v381_v58  ;;  %394 = vtanh.f32 %v70_v54 }
  0x35   :  { %v385_v0 = vpop.eup %384  ;;  %254 = vst [vmem:[#allocation5 + $0x128] sm:$0xff] %v190_v59  ;;  %v192_v1 = vmul.f32 2.0, %v383_v61  ;;  %396 = vtanh.f32 %v71_v57 }
  0x36   :  { %v387_v3 = vpop.eup %386  ;;  %255 = vst [vmem:[#allocation5 + $0x130] sm:$0xff] %v191_v62  ;;  %v193_v4 = vmul.f32 2.0, %v385_v0  ;;  %398 = vtanh.f32 %v72_v60 }
  0x37   :  { %v389_v6 = vpop.eup %388  ;;  %256 = vst [vmem:[#allocation5 + $0x138] sm:$0xff] %v192_v1  ;;  %v194_v7 = vmul.f32 2.0, %v387_v3  ;;  %400 = vtanh.f32 %v73_v63 }
  0x38   :  { %v391_v9 = vpop.eup %390  ;;  %257 = vst [vmem:[#allocation5 + $0x140] sm:$0xff] %v193_v4  ;;  %v195_v10 = vmul.f32 2.0, %v389_v6  ;;  %402 = vtanh.f32 %v74_v2 }
  0x39   :  { %v393_v12 = vpop.eup %392  ;;  %258 = vst [vmem:[#allocation5 + $0x148] sm:$0xff] %v194_v7  ;;  %v196_v13 = vmul.f32 2.0, %v391_v9  ;;  %404 = vtanh.f32 %v75_v5 }
  0x3a   :  { %v395_v15 = vpop.eup %394  ;;  %259 = vst [vmem:[#allocation5 + $0x150] sm:$0xff] %v195_v10  ;;  %v197_v16 = vmul.f32 2.0, %v393_v12  ;;  %406 = vtanh.f32 %v76_v8 }
  0x3b   :  { %v397_v18 = vpop.eup %396  ;;  %260 = vst [vmem:[#allocation5 + $0x158] sm:$0xff] %v196_v13  ;;  %v198_v19 = vmul.f32 2.0, %v395_v15  ;;  %408 = vtanh.f32 %v77_v11 }
  0x3c   :  { %v399_v21 = vpop.eup %398  ;;  %261 = vst [vmem:[#allocation5 + $0x160] sm:$0xff] %v197_v16  ;;  %v199_v22 = vmul.f32 2.0, %v397_v18  ;;  %410 = vtanh.f32 %v78_v14 }
  0x3d   :  { %v401_v24 = vpop.eup %400  ;;  %262 = vst [vmem:[#allocation5 + $0x168] sm:$0xff] %v198_v19  ;;  %v200_v25 = vmul.f32 2.0, %v399_v21  ;;  %412 = vtanh.f32 %v79_v17 }
  0x3e   :  { %v403_v27 = vpop.eup %402  ;;  %263 = vst [vmem:[#allocation5 + $0x170] sm:$0xff] %v199_v22  ;;  %v201_v28 = vmul.f32 2.0, %v401_v24  ;;  %414 = vtanh.f32 %v80_v20 }
  0x3f   :  { %v405_v30 = vpop.eup %404  ;;  %264 = vst [vmem:[#allocation5 + $0x178] sm:$0xff] %v200_v25  ;;  %v202_v31 = vmul.f32 2.0, %v403_v27  ;;  %416 = vtanh.f32 %v81_v23 }
  0x40   :  { %v407_v33 = vpop.eup %406  ;;  %265 = vst [vmem:[#allocation5 + $0x180] sm:$0xff] %v201_v28  ;;  %v203_v34 = vmul.f32 2.0, %v405_v30  ;;  %418 = vtanh.f32 %v82_v26 }
  0x41   :  { %v409_v36 = vpop.eup %408  ;;  %266 = vst [vmem:[#allocation5 + $0x188] sm:$0xff] %v202_v31  ;;  %v204_v37 = vmul.f32 2.0, %v407_v33  ;;  %420 = vtanh.f32 %v83_v29 }
  0x42   :  { %v411_v39 = vpop.eup %410  ;;  %267 = vst [vmem:[#allocation5 + $0x190] sm:$0xff] %v203_v34  ;;  %v205_v40 = vmul.f32 2.0, %v409_v36  ;;  %422 = vtanh.f32 %v84_v32 }
  0x43   :  { %v413_v42 = vpop.eup %412  ;;  %268 = vst [vmem:[#allocation5 + $0x198] sm:$0xff] %v204_v37  ;;  %v206_v43 = vmul.f32 2.0, %v411_v39  ;;  %424 = vtanh.f32 %v85_v35 }
  0x44   :  { %v415_v45 = vpop.eup %414  ;;  %269 = vst [vmem:[#allocation5 + $0x1a0] sm:$0xff] %v205_v40  ;;  %v207_v46 = vmul.f32 2.0, %v413_v42  ;;  %426 = vtanh.f32 %v86_v38 }
  0x45   :  { %v417_v47 = vpop.eup %416  ;;  %270 = vst [vmem:[#allocation5 + $0x1a8] sm:$0xff] %v206_v43  ;;  %v208_v48 = vmul.f32 2.0, %v415_v45  ;;  %428 = vtanh.f32 %v87_v41 }
  0x46   :  { %v419_v49 = vpop.eup %418  ;;  %271 = vst [vmem:[#allocation5 + $0x1b0] sm:$0xff] %v207_v46  ;;  %v209_v50 = vmul.f32 2.0, %v417_v47  ;;  %430 = vtanh.f32 %v88_v44 }
  0x47   :  { %v421_v51 = vpop.eup %420  ;;  %272 = vst [vmem:[#allocation5 + $0x1b8] sm:$0xff] %v208_v48  ;;  %v210_v52 = vmul.f32 2.0, %v419_v49 }
  0x48   :  { %v423_v53 = vpop.eup %422  ;;  %273 = vst [vmem:[#allocation5 + $0x1c0] sm:$0xff] %v209_v50  ;;  %v211_v54 = vmul.f32 2.0, %v421_v51 }
  0x49   :  { %v425_v55 = vpop.eup %424  ;;  %274 = vst [vmem:[#allocation5 + $0x1c8] sm:$0xff] %v210_v52  ;;  %v212_v56 = vmul.f32 2.0, %v423_v53 }
  0x4a   :  { %v427_v57 = vpop.eup %426  ;;  %275 = vst [vmem:[#allocation5 + $0x1d0] sm:$0xff] %v211_v54  ;;  %v213_v58 = vmul.f32 2.0, %v425_v55 }
  0x4b   :  { %v429_v59 = vpop.eup %428  ;;  %276 = vst [vmem:[#allocation5 + $0x1d8] sm:$0xff] %v212_v56  ;;  %v214_v60 = vmul.f32 2.0, %v427_v57 }
  0x4c   :  { %v431_v61 = vpop.eup %430  ;;  %277 = vst [vmem:[#allocation5 + $0x1e0] sm:$0xff] %v213_v58  ;;  %v215_v62 = vmul.f32 2.0, %v429_v59 }
  0x4d   :  { %278 = vst [vmem:[#allocation5 + $0x1e8] sm:$0xff] %v214_v60  ;;  %v216_v63 = vmul.f32 2.0, %v431_v61 }
  0x4e   :  { %279 = vst [vmem:[#allocation5 + $0x1f0] sm:$0xff] %v215_v62 }
  0x4f   :  { %280 = vst [vmem:[#allocation5 + $0x1f8] sm:$0xff] %v216_v63 }
  0x50   :  { %293 = dma.vmem_to_hbm [thread:$0]  %s286_s13, 8192, %s288_s16, [#allocation4], %s485_s11, %s485_s11, %s486_s12  }
  0x51   :  { %482 = dma.done.wait [#allocation4], 8192  }
  0x52   :  { %483 = vsyncadd [#allocation4], 4294959104 }
  0x53   :  { %298 = vsyncpa [#allocation3], 1 }
  0x54   :  { %299 = vsyncpa [#allocation4], 1 }

</bundles_post_ra>
